<compile_context>
chip_gen: v6e
topology: v6e:2x2x1
jax: 0.10.0
libtpu: 0.0.40
codegen_flags: <defaults>
</compile_context>

<pallas_src>
import functools

import jax
import jax.numpy as jnp
from jax import lax
from jax.experimental import pallas as pl
from jax.experimental.pallas import tpu as pltpu

_EPS_IN_GTS = 1e-9   # select_candidates_in_gts default eps
_EPS_IOU = 1e-9      # yolov6_iou_calculator default eps


def _pow(x, p):
    """x ** p; square-and-multiply for non-negative integer exponents."""
    p = float(p)
    if p == int(p) and int(p) >= 0:
        n = int(p)
        if n == 0:
            return jnp.ones_like(x)
        result = None
        base = x
        while n:
            if n & 1:
                result = base if result is None else result * base
            n >>= 1
            if n:
                base = base * base
        return result
    return jnp.power(x, p)


def _pad_axis(x, axis, target):
    pad = target - x.shape[axis]
    if pad <= 0:
        return x
    cfg = [(0, 0)] * x.ndim
    cfg[axis] = (0, pad)
    return jnp.pad(x, cfg)


# --------------------------------------------------------------------------- #
# Pallas kernel: per (batch, prior-tile) compute (num_gt, TP) metric tiles     #
# --------------------------------------------------------------------------- #
def _tal_metrics_kernel(gt_ref, onehot_ref, pred_t_ref, scores_t_ref, priors_ref,
                        ov_ref, al_ref, ingts_ref, *, alpha, beta, tile_p,
                        num_valid_priors):
    gt = gt_ref[0]                                    # (G, 4)
    x1g, y1g = gt[:, 0:1], gt[:, 1:2]                 # (G, 1)
    x2g, y2g = gt[:, 2:3], gt[:, 3:4]

    pred = pred_t_ref[0]                              # (4, TP)
    x1p, y1p = pred[0:1, :], pred[1:2, :]             # (1, TP)
    x2p, y2p = pred[2:3, :], pred[3:4, :]

    # ---- IoU (yolov6_iou_calculator) -> (G, TP) ----
    iw = jnp.maximum(jnp.minimum(x2g, x2p) - jnp.maximum(x1g, x1p), 0.0)
    ih = jnp.maximum(jnp.minimum(y2g, y2p) - jnp.maximum(y1g, y1p), 0.0)
    overlap = iw * ih
    area_g = jnp.maximum(x2g - x1g, 0.0) * jnp.maximum(y2g - y1g, 0.0)
    area_p = jnp.maximum(x2p - x1p, 0.0) * jnp.maximum(y2p - y1p, 0.0)
    iou = overlap / (area_g + area_p - overlap + _EPS_IOU)

    # ---- class-score gather as lane-dense one-hot matmul on the MXU ----
    # bbox_scores[g, p] = pred_scores[p, gt_label[g]]  via (G,C) x (C,TP)
    bbox_scores = jnp.dot(onehot_ref[0], scores_t_ref[0],
                          preferred_element_type=jnp.float32)   # (G, TP)

    align = _pow(bbox_scores, alpha) * _pow(iou, beta)

    # ---- prior-center-inside-gt mask (select_candidates_in_gts) ----
    pri = priors_ref[...]                             # (2, TP)
    px, py = pri[0:1, :], pri[1:2, :]                 # (1, TP)
    dmin = jnp.minimum(jnp.minimum(px - x1g, py - y1g),
                       jnp.minimum(x2g - px, y2g - py))
    in_gts = (dmin > _EPS_IN_GTS).astype(jnp.float32)

    # Zero the mask on padded prior columns so the padded arrays can be carried
    # through the downstream glue unchanged.
    if num_valid_priors is not None:
        lane = (lax.broadcasted_iota(jnp.int32, (1, tile_p), 1)
                + pl.program_id(1) * tile_p)
        in_gts = in_gts * (lane < num_valid_priors).astype(jnp.float32)

    ov_ref[0] = iou
    al_ref[0] = align
    ingts_ref[0] = in_gts


def _tal_metrics(pred_bboxes, pred_scores, priors_points, gt_labels, gt_bboxes,
                 *, alpha, beta, tile_p=512):
    """Returns overlaps, align_metrics, in_gts : (B, G, P_pad) float32."""
    B, P, C = pred_scores.shape
    G = gt_bboxes.shape[1]
    f32 = jnp.float32

    # Pick the (lane-dense) tile size first, then pad P up to a multiple of it.
    TP = min(int(tile_p), ((P + 127) // 128) * 128)
    n_ptiles = -(-P // TP)
    P_pad = n_ptiles * TP

    pred_t = _pad_axis(jnp.transpose(pred_bboxes.astype(f32), (0, 2, 1)), 2, P_pad)
    scores_t = _pad_axis(jnp.transpose(pred_scores.astype(f32), (0, 2, 1)), 2, P_pad)
    priors_t = _pad_axis(jnp.transpose(priors_points.astype(f32)), 1, P_pad)
    gt = gt_bboxes.astype(f32)
    onehot = jax.nn.one_hot(gt_labels[..., 0].astype(jnp.int32), C, dtype=f32)

    kernel = functools.partial(
        _tal_metrics_kernel, alpha=alpha, beta=beta, tile_p=TP,
        num_valid_priors=(P if P_pad != P else None))
    out_sds = jax.ShapeDtypeStruct((B, G, P_pad), f32)
    out_spec = pl.BlockSpec((1, G, TP), lambda b, p: (b, 0, p))

    overlaps, align, in_gts = pl.pallas_call(
        kernel,
        out_shape=[out_sds, out_sds, out_sds],
        grid=(B, n_ptiles),
        in_specs=[
            pl.BlockSpec((1, G, 4), lambda b, p: (b, 0, 0)),    # gt bboxes
            pl.BlockSpec((1, G, C), lambda b, p: (b, 0, 0)),    # one-hot labels
            pl.BlockSpec((1, 4, TP), lambda b, p: (b, 0, p)),   # pred bboxes (T)
            pl.BlockSpec((1, C, TP), lambda b, p: (b, 0, p)),   # pred scores (T)
            pl.BlockSpec((2, TP), lambda b, p: (0, p)),         # prior points (T)
        ],
        out_specs=[out_spec, out_spec, out_spec],
        compiler_params=pltpu.CompilerParams(
            dimension_semantics=("parallel", "parallel"),
            vmem_limit_bytes=48 * 1024 * 1024),
    )(gt, onehot, pred_t, scores_t, priors_t)

    return overlaps, align, in_gts


# --------------------------------------------------------------------------- #
# Assignment glue (plain JAX) — operates on padded (B, G, P_pad) metrics       #
# --------------------------------------------------------------------------- #
def _assign_from_metrics(overlaps, align, in_gts, gt_labels, gt_bboxes,
                         pad_bbox_flag, *, num_classes, topk, eps,
                         num_priors=None):
    # TODO(synk): top-k selection, the scatter-add count over num_priors and
    # the gt-index gathers have no clean Pallas equivalent; they stay in XLA.
    B, G, Pp = align.shape
    P = Pp if num_priors is None else num_priors
    f32 = jnp.float32
    pad = pad_bbox_flag.astype(f32)                          # (B, G, 1)
    in_gts = in_gts.astype(f32)

    # candidate metric; padded prior columns forced strictly below real zeros
    cand = align * in_gts
    if Pp != P:
        cand = jnp.where(jnp.arange(Pp) < P, cand, -jnp.inf)

    # -- select_topk_candidates (scatter-add count, no (B,G,k,P) temp) --
    k = min(topk, Pp)
    _, topk_idxs = lax.top_k(cand, k)                        # (B, G, k)
    topk_idxs = jnp.where(pad > 0, topk_idxs, 0)
    b_idx = jnp.arange(B)[:, None, None]
    g_idx = jnp.arange(G)[None, :, None]
    counts = jnp.zeros((B, G, Pp), f32).at[b_idx, g_idx, topk_idxs].add(1.0)
    is_in_topk = jnp.where(counts > 1, 0.0, counts)
    pos_mask = is_in_topk * in_gts * pad                     # (B, G, Pp)

    # -- select_highest_overlaps (applied unconditionally; equivalent) --
    fg = pos_mask.sum(axis=-2)                               # (B, Pp)
    multi = jnp.broadcast_to((fg > 1)[:, None, :], pos_mask.shape)
    is_max = jax.nn.one_hot(jnp.argmax(overlaps, axis=1), G, dtype=f32)
    is_max = jnp.transpose(is_max, (0, 2, 1))                # (B, G, Pp)
    pos_mask = jnp.where(multi, is_max, pos_mask)
    fg = pos_mask.sum(axis=-2)
    gt_idx = jnp.argmax(pos_mask, axis=-2)                   # (B, Pp)

    # -- get_targets --
    flat_idx = gt_idx + jnp.arange(B, dtype=gt_idx.dtype)[:, None] * G
    labels = gt_labels.reshape(-1).astype(jnp.int32)[flat_idx]
    labels = jnp.where(labels < 0, 0, labels)
    boxes = gt_bboxes.reshape(-1, 4)[flat_idx]               # (B, Pp, 4)
    scores = jax.nn.one_hot(labels, num_classes, dtype=f32)
    scores = jnp.where((fg > 0)[..., None], scores, 0.0)

    # -- alignment-metric normalization --
    am = align * pos_mask
    pam = am.max(axis=-1, keepdims=True)                     # (B, G, 1)
    pov = (overlaps * pos_mask).max(axis=-1, keepdims=True)  # (B, G, 1)
    norm = (am * pov / (pam + eps)).max(axis=-2)[..., None]  # (B, Pp, 1)
    scores = scores * norm

    return {
        "assigned_labels": labels[:, :P],
        "assigned_bboxes": boxes[:, :P],
        "assigned_scores": scores[:, :P],
        "fg_mask_pre_prior": (fg > 0)[:, :P],
    }


def batch_task_aligned_assigner(pred_bboxes, pred_scores, priors, gt_labels,
                                gt_bboxes, pad_bbox_flag, *, num_classes,
                                topk=13, alpha=1.0, beta=6.0, eps=1e-7,
                                tile_p=512):
    """JAX/Pallas equivalent of BatchTaskAlignedAssigner.forward (num_gt > 0)."""
    P = pred_bboxes.shape[1]
    priors_points = priors[:, :2]
    overlaps, align, in_gts = _tal_metrics(
        pred_bboxes, pred_scores, priors_points, gt_labels, gt_bboxes,
        alpha=alpha, beta=beta, tile_p=tile_p)
    return _assign_from_metrics(overlaps, align, in_gts, gt_labels,
                                gt_bboxes, pad_bbox_flag,
                                num_classes=num_classes, topk=topk, eps=eps,
                                num_priors=P)


# --------------------------------------------------------------------------- #
# Pure-JAX references (mirror the PyTorch helpers) for checking                #
# --------------------------------------------------------------------------- #
def _reference_metrics(pred_bboxes, pred_scores, priors_points, gt_labels,
                       gt_bboxes, *, alpha, beta):
    B = pred_scores.shape[0]
    ps_t = jnp.transpose(pred_scores, (0, 2, 1))                  # (B, C, P)
    labels = gt_labels[..., 0].astype(jnp.int32)                  # (B, G)
    bbox_scores = ps_t[jnp.arange(B)[:, None], labels]            # (B, G, P)

    b1 = gt_bboxes[:, :, None, :]
    b2 = pred_bboxes[:, None, :, :]
    lt = jnp.maximum(b1[..., 0:2], b2[..., 0:2])
    rb = jnp.minimum(b1[..., 2:4], b2[..., 2:4])
    wh = jnp.clip(rb - lt, 0.0)
    overlap = wh[..., 0] * wh[..., 1]
    a1 = jnp.clip(b1[..., 2:4] - b1[..., 0:2], 0.0).prod(-1)
    a2 = jnp.clip(b2[..., 2:4] - b2[..., 0:2], 0.0).prod(-1)
    overlaps = overlap / (a1 + a2 - overlap + _EPS_IOU)

    align = _pow(bbox_scores, alpha) * _pow(overlaps, beta)

    deltas = jnp.concatenate(
        [priors_points[None, None] - gt_bboxes[:, :, None, 0:2],
         gt_bboxes[:, :, None, 2:4] - priors_points[None, None]], axis=-1)
    in_gts = (deltas.min(axis=-1) > _EPS_IN_GTS).astype(jnp.float32)
    return overlaps, align, in_gts


def _reference_assign(overlaps, align, in_gts, gt_labels, gt_bboxes,
                      pad_bbox_flag, *, num_classes, topk, eps):
    """Literal (unpadded, one-hot count) glue mirroring the PyTorch module."""
    B, G, P = align.shape
    f32 = jnp.float32
    pad = pad_bbox_flag.astype(f32)
    cand = align * in_gts

    k = min(topk, P)
    _, topk_idxs = lax.top_k(cand, k)
    topk_idxs = jnp.where(pad > 0, topk_idxs, 0)
    counts = jax.nn.one_hot(topk_idxs, P, dtype=f32).sum(axis=-2)
    is_in_topk = jnp.where(counts > 1, 0.0, counts)
    pos_mask = is_in_topk * in_gts * pad

    fg = pos_mask.sum(axis=-2)
    multi = jnp.broadcast_to((fg > 1)[:, None, :], pos_mask.shape)
    is_max = jnp.transpose(
        jax.nn.one_hot(jnp.argmax(overlaps, axis=1), G, dtype=f32), (0, 2, 1))
    pos_mask = jnp.where(multi, is_max, pos_mask)
    fg = pos_mask.sum(axis=-2)
    gt_idx = jnp.argmax(pos_mask, axis=-2)

    flat_idx = gt_idx + jnp.arange(B, dtype=gt_idx.dtype)[:, None] * G
    labels = gt_labels.reshape(-1).astype(jnp.int32)[flat_idx]
    labels = jnp.where(labels < 0, 0, labels)
    boxes = gt_bboxes.reshape(-1, 4)[flat_idx]
    scores = jax.nn.one_hot(labels, num_classes, dtype=f32)
    scores = jnp.where((fg > 0)[..., None], scores, 0.0)

    am = align * pos_mask
    pam = am.max(axis=-1, keepdims=True)
    pov = (overlaps * pos_mask).max(axis=-1, keepdims=True)
    norm = (am * pov / (pam + eps)).max(axis=-2)[..., None]
    return {
        "assigned_labels": labels,
        "assigned_bboxes": boxes,
        "assigned_scores": scores * norm,
        "fg_mask_pre_prior": fg > 0,
    }


if __name__ == "__main__":
    key = jax.random.PRNGKey(0)
    ks = jax.random.split(key, 6)

    B, side, C, G, topk = 2, 15, 16, 8, 13
    P = side * side                                   # 225 priors (exercises padding)

    ys, xs = jnp.meshgrid(jnp.arange(side, dtype=jnp.float32) + 0.5,
                          jnp.arange(side, dtype=jnp.float32) + 0.5,
                          indexing="ij")
    pts = jnp.stack([xs.reshape(-1), ys.reshape(-1)], axis=-1)      # (P, 2)
    priors = jnp.concatenate([pts, jnp.ones((P, 2), jnp.float32)], axis=-1)

    gt_ctr = jax.random.uniform(ks[0], (B, G, 2), minval=3.0, maxval=12.0)
    gt_half = jax.random.uniform(ks[1], (B, G, 2), minval=1.0, maxval=4.0)
    gt_bboxes = jnp.concatenate([gt_ctr - gt_half, gt_ctr + gt_half], axis=-1)
    gt_labels = jax.random.randint(ks[2], (B, G, 1), 0, C)
    n_valid = jnp.array([5, 3])
    pad_bbox_flag = (jnp.arange(G)[None, :, None] < n_valid[:, None, None]
                     ).astype(jnp.float32)

    p_ctr = pts[None] + jax.random.uniform(ks[3], (B, P, 2), minval=-1.0, maxval=1.0)
    p_half = jax.random.uniform(ks[4], (B, P, 2), minval=0.5, maxval=3.0)
    pred_bboxes = jnp.concatenate([p_ctr - p_half, p_ctr + p_half], axis=-1)
    pred_scores = jax.random.uniform(ks[5], (B, P, C))

    out = batch_task_aligned_assigner(
        pred_bboxes, pred_scores, priors, gt_labels, gt_bboxes, pad_bbox_flag,
        num_classes=C, topk=topk)
    out = jax.block_until_ready(out)

    # ---- check the Pallas metric kernel against the pure-JAX reference ----
    ov_k, al_k, gts_k = _tal_metrics(
        pred_bboxes, pred_scores, priors[:, :2], gt_labels, gt_bboxes,
        alpha=1.0, beta=6.0)
    ov_r, al_r, gts_r = _reference_metrics(
        pred_bboxes, pred_scores, priors[:, :2], gt_labels, gt_bboxes,
        alpha=1.0, beta=6.0)
    assert jnp.allclose(ov_k[..., :P], ov_r, atol=1e-5, rtol=1e-5)
    assert jnp.allclose(al_k[..., :P], al_r, atol=1e-5, rtol=1e-5)
    assert jnp.array_equal(gts_k[..., :P], gts_r)
    # padded prior columns must carry in_gts == 0
    assert jnp.all(gts_k[..., P:] == 0.0)

    # ---- check full assigner against the literal (unpadded) reference glue ----
    ref = _reference_assign(ov_r, al_r, gts_r, gt_labels, gt_bboxes,
                            pad_bbox_flag, num_classes=C, topk=topk, eps=1e-7)
    assert out["assigned_labels"].shape == (B, P)
    assert out["assigned_bboxes"].shape == (B, P, 4)
    assert out["assigned_scores"].shape == (B, P, C)
    assert out["fg_mask_pre_prior"].shape == (B, P)
    assert jnp.array_equal(out["fg_mask_pre_prior"], ref["fg_mask_pre_prior"])
    assert jnp.array_equal(out["assigned_labels"], ref["assigned_labels"])
    assert jnp.allclose(out["assigned_bboxes"], ref["assigned_bboxes"], atol=1e-5)
    assert jnp.allclose(out["assigned_scores"], ref["assigned_scores"], atol=1e-5)

    print("KERNEL_OK")
</pallas_src>

<mosaic_0001>
module attributes {stable_mosaic.version = 11 : i64} {
  func.func @_tal_metrics_kernel(%arg0: i32, %arg1: i32, %arg2: memref<1x8x4xf32, #tpu.memory_space<vmem>>, %arg3: memref<1x8x16xf32, #tpu.memory_space<vmem>>, %arg4: memref<1x4x256xf32, #tpu.memory_space<vmem>>, %arg5: memref<1x16x256xf32, #tpu.memory_space<vmem>>, %arg6: memref<2x256xf32, #tpu.memory_space<vmem>>, %arg7: memref<1x8x256xf32, #tpu.memory_space<vmem>>, %arg8: memref<1x8x256xf32, #tpu.memory_space<vmem>>, %arg9: memref<1x8x256xf32, #tpu.memory_space<vmem>>) attributes {dimension_semantics = [#tpu.dimension_semantics<parallel>, #tpu.dimension_semantics<parallel>], iteration_bounds = array<i64: 2, 1>, scalar_prefetch = 0 : i64, scratch_operands = 0 : i64, tpu.core_type = #tpu.core_type<tc>, window_params = [{transform_indices = @transform_0, window_bounds = array<i64: 1, 8, 4>}, {transform_indices = @transform_1, window_bounds = array<i64: 1, 8, 16>}, {transform_indices = @transform_2, window_bounds = array<i64: 1, 4, 256>}, {transform_indices = @transform_3, window_bounds = array<i64: 1, 16, 256>}, {transform_indices = @transform_4, window_bounds = array<i64: 2, 256>}, {transform_indices = @transform_5, window_bounds = array<i64: 1, 8, 256>}, {transform_indices = @transform_6, window_bounds = array<i64: 1, 8, 256>}, {transform_indices = @transform_7, window_bounds = array<i64: 1, 8, 256>}]} {
    %c0 = arith.constant 0 : index
    %c0_0 = arith.constant 0 : index
    %c0_1 = arith.constant 0 : index
    %0 = vector.load %arg2[%c0, %c0_0, %c0_1] : memref<1x8x4xf32, #tpu.memory_space<vmem>>, vector<1x8x4xf32>
    %1 = vector.shape_cast %0 : vector<1x8x4xf32> to vector<8x4xf32>
    %2 = vector.extract_strided_slice %1 {offsets = [0, 0], sizes = [8, 1], strides = [1, 1]} : vector<8x4xf32> to vector<8x1xf32>
    %3 = vector.extract_strided_slice %1 {offsets = [0, 1], sizes = [8, 1], strides = [1, 1]} : vector<8x4xf32> to vector<8x1xf32>
    %4 = vector.extract_strided_slice %1 {offsets = [0, 2], sizes = [8, 1], strides = [1, 1]} : vector<8x4xf32> to vector<8x1xf32>
    %5 = vector.extract_strided_slice %1 {offsets = [0, 3], sizes = [8, 1], strides = [1, 1]} : vector<8x4xf32> to vector<8x1xf32>
    %c0_2 = arith.constant 0 : index
    %c0_3 = arith.constant 0 : index
    %c0_4 = arith.constant 0 : index
    %6 = vector.load %arg4[%c0_2, %c0_3, %c0_4] : memref<1x4x256xf32, #tpu.memory_space<vmem>>, vector<1x4x256xf32>
    %7 = vector.shape_cast %6 : vector<1x4x256xf32> to vector<4x256xf32>
    %8 = vector.extract_strided_slice %7 {offsets = [0, 0], sizes = [1, 256], strides = [1, 1]} : vector<4x256xf32> to vector<1x256xf32>
    %9 = vector.extract_strided_slice %7 {offsets = [1, 0], sizes = [1, 256], strides = [1, 1]} : vector<4x256xf32> to vector<1x256xf32>
    %10 = vector.extract_strided_slice %7 {offsets = [2, 0], sizes = [1, 256], strides = [1, 1]} : vector<4x256xf32> to vector<1x256xf32>
    %11 = vector.extract_strided_slice %7 {offsets = [3, 0], sizes = [1, 256], strides = [1, 1]} : vector<4x256xf32> to vector<1x256xf32>
    %12 = vector.broadcast %4 : vector<8x1xf32> to vector<8x256xf32>
    %13 = vector.broadcast %10 : vector<1x256xf32> to vector<8x256xf32>
    %14 = arith.minimumf %12, %13 : vector<8x256xf32>
    %15 = vector.broadcast %2 : vector<8x1xf32> to vector<8x256xf32>
    %16 = vector.broadcast %8 : vector<1x256xf32> to vector<8x256xf32>
    %17 = arith.maximumf %15, %16 : vector<8x256xf32>
    %18 = arith.subf %14, %17 : vector<8x256xf32>
    %cst = arith.constant 0.000000e+00 : f32
    %19 = vector.broadcast %cst : f32 to vector<8x256xf32>
    %20 = arith.maximumf %18, %19 : vector<8x256xf32>
    %21 = vector.broadcast %5 : vector<8x1xf32> to vector<8x256xf32>
    %22 = vector.broadcast %11 : vector<1x256xf32> to vector<8x256xf32>
    %23 = arith.minimumf %21, %22 : vector<8x256xf32>
    %24 = vector.broadcast %3 : vector<8x1xf32> to vector<8x256xf32>
    %25 = vector.broadcast %9 : vector<1x256xf32> to vector<8x256xf32>
    %26 = arith.maximumf %24, %25 : vector<8x256xf32>
    %27 = arith.subf %23, %26 : vector<8x256xf32>
    %cst_5 = arith.constant 0.000000e+00 : f32
    %28 = vector.broadcast %cst_5 : f32 to vector<8x256xf32>
    %29 = arith.maximumf %27, %28 : vector<8x256xf32>
    %30 = arith.mulf %20, %29 : vector<8x256xf32>
    %31 = arith.subf %4, %2 : vector<8x1xf32>
    %cst_6 = arith.constant 0.000000e+00 : f32
    %32 = vector.broadcast %cst_6 : f32 to vector<8x1xf32>
    %33 = arith.maximumf %31, %32 : vector<8x1xf32>
    %34 = arith.subf %5, %3 : vector<8x1xf32>
    %cst_7 = arith.constant 0.000000e+00 : f32
    %35 = vector.broadcast %cst_7 : f32 to vector<8x1xf32>
    %36 = arith.maximumf %34, %35 : vector<8x1xf32>
    %37 = arith.mulf %33, %36 : vector<8x1xf32>
    %38 = arith.subf %10, %8 : vector<1x256xf32>
    %cst_8 = arith.constant 0.000000e+00 : f32
    %39 = vector.broadcast %cst_8 : f32 to vector<1x256xf32>
    %40 = arith.maximumf %38, %39 : vector<1x256xf32>
    %41 = arith.subf %11, %9 : vector<1x256xf32>
    %cst_9 = arith.constant 0.000000e+00 : f32
    %42 = vector.broadcast %cst_9 : f32 to vector<1x256xf32>
    %43 = arith.maximumf %41, %42 : vector<1x256xf32>
    %44 = arith.mulf %40, %43 : vector<1x256xf32>
    %45 = vector.broadcast %37 : vector<8x1xf32> to vector<8x256xf32>
    %46 = vector.broadcast %44 : vector<1x256xf32> to vector<8x256xf32>
    %47 = arith.addf %45, %46 : vector<8x256xf32>
    %48 = arith.subf %47, %30 : vector<8x256xf32>
    %cst_10 = arith.constant 9.99999971E-10 : f32
    %49 = vector.broadcast %cst_10 : f32 to vector<8x256xf32>
    %50 = arith.addf %48, %49 : vector<8x256xf32>
    %51 = arith.divf %30, %50 : vector<8x256xf32>
    %c0_11 = arith.constant 0 : index
    %c0_12 = arith.constant 0 : index
    %c0_13 = arith.constant 0 : index
    %52 = vector.load %arg3[%c0_11, %c0_12, %c0_13] : memref<1x8x16xf32, #tpu.memory_space<vmem>>, vector<1x8x16xf32>
    %53 = vector.shape_cast %52 : vector<1x8x16xf32> to vector<8x16xf32>
    %c0_14 = arith.constant 0 : index
    %c0_15 = arith.constant 0 : index
    %c0_16 = arith.constant 0 : index
    %54 = vector.load %arg5[%c0_14, %c0_15, %c0_16] : memref<1x16x256xf32, #tpu.memory_space<vmem>>, vector<1x16x256xf32>
    %55 = vector.shape_cast %54 : vector<1x16x256xf32> to vector<16x256xf32>
    %cst_17 = arith.constant dense<0.000000e+00> : vector<8x256xf32>
    %56 = tpu.matmul %53, %55, %cst_17 {dimension_numbers = #tpu.dot_dimension_numbers<[1], [0], [0], [1], [0, 0, 1, 1], [], []>} : vector<8x16xf32>, vector<16x256xf32>, vector<8x256xf32> -> vector<8x256xf32>
    %57 = arith.mulf %51, %51 : vector<8x256xf32>
    %58 = arith.mulf %57, %57 : vector<8x256xf32>
    %59 = arith.mulf %57, %58 : vector<8x256xf32>
    %60 = arith.mulf %56, %59 : vector<8x256xf32>
    %c0_18 = arith.constant 0 : index
    %c0_19 = arith.constant 0 : index
    %61 = vector.load %arg6[%c0_18, %c0_19] : memref<2x256xf32, #tpu.memory_space<vmem>>, vector<2x256xf32>
    %62 = vector.extract_strided_slice %61 {offsets = [0, 0], sizes = [1, 256], strides = [1, 1]} : vector<2x256xf32> to vector<1x256xf32>
    %63 = vector.extract_strided_slice %61 {offsets = [1, 0], sizes = [1, 256], strides = [1, 1]} : vector<2x256xf32> to vector<1x256xf32>
    %64 = vector.broadcast %62 : vector<1x256xf32> to vector<8x256xf32>
    %65 = vector.broadcast %2 : vector<8x1xf32> to vector<8x256xf32>
    %66 = arith.subf %64, %65 : vector<8x256xf32>
    %67 = vector.broadcast %63 : vector<1x256xf32> to vector<8x256xf32>
    %68 = vector.broadcast %3 : vector<8x1xf32> to vector<8x256xf32>
    %69 = arith.subf %67, %68 : vector<8x256xf32>
    %70 = arith.minimumf %66, %69 : vector<8x256xf32>
    %71 = vector.broadcast %4 : vector<8x1xf32> to vector<8x256xf32>
    %72 = vector.broadcast %62 : vector<1x256xf32> to vector<8x256xf32>
    %73 = arith.subf %71, %72 : vector<8x256xf32>
    %74 = vector.broadcast %5 : vector<8x1xf32> to vector<8x256xf32>
    %75 = vector.broadcast %63 : vector<1x256xf32> to vector<8x256xf32>
    %76 = arith.subf %74, %75 : vector<8x256xf32>
    %77 = arith.minimumf %73, %76 : vector<8x256xf32>
    %78 = arith.minimumf %70, %77 : vector<8x256xf32>
    %cst_20 = arith.constant 9.99999971E-10 : f32
    %79 = vector.broadcast %cst_20 : f32 to vector<8x256xf32>
    %80 = arith.cmpf ogt, %78, %79 : vector<8x256xf32>
    %81 = arith.extui %80 : vector<8x256xi1> to vector<8x256xi32>
    %82 = arith.sitofp %81 : vector<8x256xi32> to vector<8x256xf32>
    %83 = tpu.iota {dimensions = array<i32: 1>} : vector<1x256xi32>
    %c256_i32 = arith.constant 256 : i32
    %84 = arith.muli %arg1, %c256_i32 : i32
    %85 = vector.broadcast %84 : i32 to vector<1x256xi32>
    %86 = arith.addi %83, %85 : vector<1x256xi32>
    %c225_i32 = arith.constant 225 : i32
    %87 = vector.broadcast %c225_i32 : i32 to vector<1x256xi32>
    %88 = arith.cmpi slt, %86, %87 : vector<1x256xi32>
    %89 = arith.extui %88 : vector<1x256xi1> to vector<1x256xi32>
    %90 = arith.sitofp %89 : vector<1x256xi32> to vector<1x256xf32>
    %91 = vector.broadcast %90 : vector<1x256xf32> to vector<8x256xf32>
    %92 = arith.mulf %82, %91 : vector<8x256xf32>
    %c0_21 = arith.constant 0 : index
    %c0_22 = arith.constant 0 : index
    %c0_23 = arith.constant 0 : index
    %93 = vector.load %arg7[%c0_21, %c0_22, %c0_23] : memref<1x8x256xf32, #tpu.memory_space<vmem>>, vector<1x8x256xf32>
    %94 = vector.shape_cast %93 : vector<1x8x256xf32> to vector<8x256xf32>
    %95 = vector.shape_cast %51 : vector<8x256xf32> to vector<1x8x256xf32>
    tpu.vector_store %arg7[%c0_21, %c0_22, %c0_23], %95 {strides = array<i32>} : memref<1x8x256xf32, #tpu.memory_space<vmem>>, vector<1x8x256xf32>,
    %c0_24 = arith.constant 0 : index
    %c0_25 = arith.constant 0 : index
    %c0_26 = arith.constant 0 : index
    %96 = vector.load %arg8[%c0_24, %c0_25, %c0_26] : memref<1x8x256xf32, #tpu.memory_space<vmem>>, vector<1x8x256xf32>
    %97 = vector.shape_cast %96 : vector<1x8x256xf32> to vector<8x256xf32>
    %98 = vector.shape_cast %60 : vector<8x256xf32> to vector<1x8x256xf32>
    tpu.vector_store %arg8[%c0_24, %c0_25, %c0_26], %98 {strides = array<i32>} : memref<1x8x256xf32, #tpu.memory_space<vmem>>, vector<1x8x256xf32>,
    %c0_27 = arith.constant 0 : index
    %c0_28 = arith.constant 0 : index
    %c0_29 = arith.constant 0 : index
    %99 = vector.load %arg9[%c0_27, %c0_28, %c0_29] : memref<1x8x256xf32, #tpu.memory_space<vmem>>, vector<1x8x256xf32>
    %100 = vector.shape_cast %99 : vector<1x8x256xf32> to vector<8x256xf32>
    %101 = vector.shape_cast %92 : vector<8x256xf32> to vector<1x8x256xf32>
    tpu.vector_store %arg9[%c0_27, %c0_28, %c0_29], %101 {strides = array<i32>} : memref<1x8x256xf32, #tpu.memory_space<vmem>>, vector<1x8x256xf32>,
    return
  }
  func.func @transform_0(%arg0: i32, %arg1: i32) -> (i32, i32, i32) {
    %c0_i32 = arith.constant 0 : i32
    %c0_i32_0 = arith.constant 0 : i32
    %c0_i32_1 = arith.constant 0 : i32
    return %arg0, %c0_i32, %c0_i32_0 : i32, i32, i32
  }
  func.func @transform_1(%arg0: i32, %arg1: i32) -> (i32, i32, i32) {
    %c0_i32 = arith.constant 0 : i32
    %c0_i32_0 = arith.constant 0 : i32
    %c0_i32_1 = arith.constant 0 : i32
    return %arg0, %c0_i32, %c0_i32_0 : i32, i32, i32
  }
  func.func @transform_2(%arg0: i32, %arg1: i32) -> (i32, i32, i32) {
    %c0_i32 = arith.constant 0 : i32
    %c0_i32_0 = arith.constant 0 : i32
    return %arg0, %c0_i32, %arg1 : i32, i32, i32
  }
  func.func @transform_3(%arg0: i32, %arg1: i32) -> (i32, i32, i32) {
    %c0_i32 = arith.constant 0 : i32
    %c0_i32_0 = arith.constant 0 : i32
    return %arg0, %c0_i32, %arg1 : i32, i32, i32
  }
  func.func @transform_4(%arg0: i32, %arg1: i32) -> (i32, i32) {
    %c0_i32 = arith.constant 0 : i32
    %c0_i32_0 = arith.constant 0 : i32
    return %c0_i32, %arg1 : i32, i32
  }
  func.func @transform_5(%arg0: i32, %arg1: i32) -> (i32, i32, i32) {
    %c0_i32 = arith.constant 0 : i32
    %c0_i32_0 = arith.constant 0 : i32
    return %arg0, %c0_i32, %arg1 : i32, i32, i32
  }
  func.func @transform_6(%arg0: i32, %arg1: i32) -> (i32, i32, i32) {
    %c0_i32 = arith.constant 0 : i32
    %c0_i32_0 = arith.constant 0 : i32
    return %arg0, %c0_i32, %arg1 : i32, i32, i32
  }
  func.func @transform_7(%arg0: i32, %arg1: i32) -> (i32, i32, i32) {
    %c0_i32 = arith.constant 0 : i32
    %c0_i32_0 = arith.constant 0 : i32
    return %arg0, %c0_i32, %arg1 : i32, i32, i32
  }
}

</mosaic_0001>

<bundles_post_ra>
// kernel: tpu_custom_call.1
= control target key start
LH: loop header
LB: loop body
LE: loop exit
PB: predicated region body
PF: predicated region fallthrough
CT: control target
= control target key end

     0   :  { %s1734_s0 = inlined_call_operand.vmem [shape: f32[2,8,4], index: 0, kind: input, shape index: {}]   ;;  %s1735_s1 = inlined_call_operand.vmem [shape: f32[2,8,16], index: 1, kind: input, shape index: {}]   ;;  %s1736_s2 = inlined_call_operand.hbm [shape: f32[2,4,256], index: 2, kind: input, shape index: {}]   ;;  %s1737_s3 = inlined_call_operand.hbm [shape: f32[2,16,256], index: 3, kind: input, shape index: {}]   ;;  %s1738_s4 = inlined_call_operand.vmem [shape: f32[2,256], index: 4, kind: input, shape index: {}]   ;;  %s1739_s5 = inlined_call_operand.hbm [shape: f32[2,8,256], index: 5, kind: output, shape index: {0}]   ;;  %s1740_s6 = inlined_call_operand.hbm [shape: f32[2,8,256], index: 6, kind: output, shape index: {1}]   ;;  %s1741_s7 = inlined_call_operand.hbm [shape: f32[2,8,256], index: 7, kind: output, shape index: {2}]  }
   0x1   :  { %1745 = sst [smem:[#allocation18_spill]] %s1736_s2 }
   0x2   :  { %13 = vsyncpa [#allocation3], 0 }
   0x3   :  { %15 = vsyncpa [#allocation3 + $0x1], 0 }
   0x4   :  { %16 = vsyncpa [#allocation6], 0 }
   0x5   :  { %18 = vsyncpa [#allocation6 + $0x1], 0 }
   0x6   :  { %19 = vsyncpa [#allocation4], 0 }
   0x7   :  { %21 = vsyncpa [#allocation4 + $0x1], 0 }
   0x8   :  { %22 = vsyncpa [#allocation9], 0 }
   0x9   :  { %24 = vsyncpa [#allocation9 + $0x1], 0  ;;  %s1433_s24 = smov 0   ;;  %s1435_s25 = smov 0  }
   0xa   :  { %s1437_s26 = smov 0   ;;  %s1439_s27 = smov 0  }
   0xb   :  { %s1441_s28 = smov 0   ;;  %s1443_s29 = smov 0  }
   0xc LB: > { %1746 = sst [smem:[#allocation15_spill]] %s1365_s26  ;;  %s1464_s30 = sadd.s32 4294967295, %s1377_s29   ;;  %s1377_s29 = sphi %s1443_s29, %s30_s29   ;;  %s1373_s28 = sphi %s1441_s28, %s1764_s28   ;;  %s1369_s27 = sphi %s1439_s27, %s1763_s27   ;;  %s1365_s26 = sphi %s1437_s26, %s1759_s26   ;;  %s1361_s25 = sphi %s1435_s25, %s1762_s25   ;;  %s1357_s24 = sphi %s1433_s24, %s1761_s24  }
   0xd   : > { %s1742_s8 = sadd.s32 4294967294, %s1377_s29   ;;  %s42_s9 = sadd.s32 1, %s1373_s28 }
   0xe   : > { %s103_s10 = sadd.s32 1, %s1365_s26  ;;  %p44_p0 = scmp.ge.s32.totalorder %s42_s9, 2 }
   0xf   : > { %p110_p1 = scmp.ne.s32.totalorder %s1365_s26, %s1361_s25  ;;  %p111_p2 = scmp.eq.s32.totalorder %s1377_s29, 0 }
  0x10   : > { %p116_p3 = scmp.ne.s32.totalorder %s1361_s25, %s1357_s24  ;;  %s1766_s9 = smov (%p44_p0, %s42_s9), 0 }
  0x11   : > { %1747 = sst [smem:[#allocation16_spill]] %s1766_s9  ;;  %p1476_p4 = por %p111_p2, %p110_p1 }
  0x12   : > { %p117_p5 = scmp.eq.s32.totalorder %s1464_s30, 0  ;;  %s98_s12 = ssub.s32 %s1373_s28, %s1766_s9 }
  0x13   : > { %p196_p6 = scmp.eq.s32.totalorder %s1464_s30, 1  ;;  %p101_p7 = scmp.eq.s32.totalorder %s98_s12, 0 }
  0x14   : > { %p1484_p8 = por %p117_p5, %p116_p3  ;;  %p202_p10 = scmp.eq.s32.totalorder %s1742_s8, 1 }
  0x15   : > { %p1488_p9 = por %p196_p6, %p110_p1  ;;  %p1112_p13 = scmp.lt.s32.totalorder %s1377_s29, 2 }
  0x16   : > { %s1495_s15 = scalar_select %p101_p7, %s1365_s26, %s103_s10  }
  0x17   : > { %p1497_p11 = por %p202_p10, %p116_p3  ;;  %s1504_s17 = sand.u32 1, %s1365_s26  }
  0x18   : > { %1751 = sst [smem:[#allocation17_spill]] %s1495_s15  ;;  %s1050_s18 = sshll.u32 %s1504_s17, 3 }
  0x19   : > { %s1080_s19 = sshll.u32 %s1373_s28, 7  ;;  %s1753_s2 = sld [smem:[#allocation18_spill]] }
  0x1a   : > { %s305_s23 = scalar_lea.vmem [#allocation2], %s1050_s18  ;;  %p1513_p0 = pnand %p1112_p13, %p1476_p4 }
  0x1b   : > { %s315_s12 = sshll.u32 %s305_s23, 4  ;;  %p1056_p1 = scmp.ge.s32.totalorder %s1377_s29, 1  ;;  %s316_s12 = int_to_ptr.vmem [resolvable:$true] %s315_s12 }
  0x1c   : > { %p343_p2 = scmp.lt.s32.totalorder %s1377_s29, 3  ;;  %s302_s8 = scalar_lea.sflag [#allocation3], %s1504_s17 }
  0x1d   : > { %p1183_p3 = pneg %p1513_p0  ;;  %s1194_s9 = scalar_lea.vmem %s316_s12, 128 }
  0x1e   : > { %p1195_p5 = scmp.ne.s32.totalorder %s316_s12, %s1194_s9  ;;  %s1379_s18 = smov [#allocation2]  }
  0x1f   : > { %s313_s22 = scalar_lea.hbm %s1753_s2, %s1080_s19  ;;  %s1199_s19 = sshll.u32 %s1379_s18, 4  ;;  %s1200_s19 = int_to_ptr.vmem [resolvable:$false] %s1199_s19 }
  0x20   : > { %p1197_p6 = pnand %p1195_p5, %p1183_p3  ;;  %s1201_s11 = scalar_lea.vmem %s1200_s19, 256 }
  0x21   : > { %p1202_p4 = scmp.lt.s32.totalorder %s316_s12, %s1200_s19  ;;  %p1203_p10 = scmp.lt.s32.totalorder %s1201_s11, %s1194_s9 }
  0x22   : > { %p1198_p7 = pneg %p1197_p6 }
  0x23   : > { %p1204_p13 = por %p1203_p10, %p1202_p4 }
  0x25   : > { %p1205_p12 = pnand %p1204_p13, %p1198_p7 }
  0x27   : > { %1208 = shalt.err (!%p1205_p12)
}
  0x28   : > { %1098 = dma.hbm_to_vmem [thread:$0]  (!%p1513_p0), %s313_s22, 128, %s316_s12, %s302_s8  }
  0x29   : > { %p1531_p5 = pnand %p1056_p1, %p343_p2  ;;  %s1053_s21 = sshll.u32 %s1504_s17, 5 }
  0x2a   : > { %s1081_s9 = sshll.u32 %s1373_s28, 9  ;;  %s326_s11 = scalar_lea.vmem [#allocation5], %s1053_s21 }
  0x2b   : > { %s334_s19 = scalar_lea.hbm %s1737_s3, %s1081_s9  ;;  %s335_s2 = sshll.u32 %s326_s11, 4  ;;  %s336_s2 = int_to_ptr.vmem [resolvable:$true] %s335_s2 }
  0x2c   : > { %s323_s15 = scalar_lea.sflag [#allocation6], %s1504_s17  ;;  %s1222_s26 = scalar_lea.vmem %s336_s2, 512 }
  0x2d   : > { %p1223_p12 = scmp.ne.s32.totalorder %s336_s2, %s1222_s26  ;;  %s1380_s8 = smov [#allocation5]  }
  0x2e   : > { %s1227_s22 = sshll.u32 %s1380_s8, 4  ;;  %s1228_s22 = int_to_ptr.vmem [resolvable:$false] %s1227_s22 }
  0x2f   : > { %p1225_p6 = pnand %p1223_p12, %p1183_p3  ;;  %s1229_s12 = scalar_lea.vmem %s1228_s22, 1024 }
  0x30   : > { %p1230_p1 = scmp.lt.s32.totalorder %s336_s2, %s1228_s22  ;;  %p1231_p2 = scmp.lt.s32.totalorder %s1229_s12, %s1222_s26 }
  0x31   : > { %p1226_p7 = pneg %p1225_p6 }
  0x32   : > { %p1232_p4 = por %p1231_p2, %p1230_p1 }
  0x34   : > { %p1233_p10 = pnand %p1232_p4, %p1226_p7 }
  0x36   : > { %1236 = shalt.err (!%p1233_p10)
}
  0x37   : > { %s1381_s9 = smov 256   ;;  %s1382_s21 = smov 16  }
  0x38   : > { %1101 = dma.hbm_to_vmem [thread:$0]  (!%p1513_p0), %s334_s19, 512, %s336_s2, %s323_s15, %s1381_s9, %s1381_s9, %s1382_s21  }
  0x39   : > { %347 = sbr.rel (%p1531_p5) target bundleno = 516 (0x204), region = 40  ;;  %s1549_s17 = sand.u32 (!%p1531_p5), 1, %s1361_s25  }
  0x3a   : > { %s1057_s23 = sshll.u32 (!%p1531_p5), %s1549_s17, 3  ;;  %s350_s18 = scalar_lea.sflag (!%p1531_p5), [#allocation3], %s1549_s17 }
  0x3b   : > { %s1553_s26 = scalar_lea.vmem (!%p1531_p5), [#allocation2], %s1057_s23 }
  0x3e   : > { %1340 = dma.done.wait (%p1484_p8), %s350_s18, 128  }
  0x3f   : > { %1342 = vsyncadd (%p1484_p8), %s350_s18, 4294967168  ;;  %s1058_s2 = sshll.u32 %s1549_s17, 5  ;;  %s359_s15 = scalar_lea.sflag [#allocation6], %s1549_s17 }
  0x40   : > { %s362_s10 = scalar_lea.vmem [#allocation5], %s1058_s2 }
  0x41   : > { %1344 = dma.done.wait (%p1484_p8), %s359_s15, 512  }
  0x42   : > { %1346 = vsyncadd (%p1484_p8), %s359_s15, 4294966784  ;;  %p421_p0 = scmp.lt.s32.totalorder %s1369_s27, 1  ;;  %v1383_v0 = vmov 0.0   ;;  %v1384_v1 = vmov 2   ;;  %v1385_v2 = vmov 3   ;;  %v607_v4 = vld [vmem:[%s362_s10 + $0x18] sm:$0xff]  ;;  %v448_v11 = vlaneseq }
  0x43   : > { %676 = vmatprep.mubr.f32.mxu0 %v1383_v0  ;;  %1171 = vset.pattern.permute.xlu1 %v1384_v1  ;;  %v606_v5 = vld [vmem:[%s362_s10 + $0x10] sm:$0xff]  ;;  %s1386_s21 = smov 2   ;;  %v605_v6 = vld [vmem:[%s362_s10 + $0x8] sm:$0xff]  ;;  %v604_v7 = vld [vmem:[%s362_s10] sm:$0xff]  ;;  %vm608_vm0 = vcmask 130048   ;;  %v1387_v9 = vmov 0  }
  0x44   : > { %s422_s20 = scalar_select %p421_p0, %s1369_s27, 1  ;;  %1173 = vset.pattern.permute.xlu0 %v1385_v2  ;;  %640 = vmatprep.subr.mxu0 %v607_v4  ;;  %v1388_v10 = vmov 1   ;;  %v449_v12 = vshrl.u32 %v448_v11, 7  ;;  %v1575_v13 = vld [vmem:[%s1553_s26] sm:$0xff] }
  0x45   : > { %641 = vmatpush1.msra.mxu0 %v606_v5  ;;  %s1389_s23 = smov 127   ;;  %v560_v40 = vrot.slane %v1575_v13, 6  ;;  %v691_v52 = vld [vmem:[%s1738_s4] sm:$0xf]  ;;  %s1601_s2 = sshll.u32 %s1549_s17, 4 }
  0x46   : > { %s1062_s19 = sshll.u32 %s422_s20, 3  ;;  %642 = vmatprep.subr.mxu0 %v605_v6  ;;  %v454_v14 = vsub.s32 6, %v449_v12  ;;  %v478_v15 = vsub.s32 4, %v449_v12  ;;  %v530_v16 = vsub.s32 5, %v449_v12  ;;  %v1577_v17 = vsub.s32 2, %v449_v12  ;;  %s1607_s15 = scalar_lea.vmem [#allocation10], %s1601_s2 }
  0x47   : > { %s424_s22 = scalar_lea.vmem %s1734_s0, %s1062_s19  ;;  %s428_s13 = scalar_lea.vmem %s1735_s1, %s1062_s19  ;;  %643 = vmatpush1.msra.mxu0 %v604_v7  ;;  %v474_v19 = vsub.s32 0, %v449_v12  ;;  %v526_v21 = vsub.s32 1, %v449_v12  ;;  %v506_v27 = vsub.s32 7, %v449_v12  ;;  %v502_v29 = vsub.s32 3, %v449_v12 }
  0x48   : > { %v440_v3 = vld [vmem:[%s424_s22] sm:$0xff]  ;;  %v455_v18 = vrot.slane %v1575_v13, %v454_v14  ;;  %v479_v20 = vrot.slane %v1575_v13, %v478_v15  ;;  %v531_v22 = vrot.slane %v1575_v13, %v530_v16  ;;  %v451_v32 = vrot.slane %v1575_v13, %v1577_v17  ;;  %s1614_s10 = sshll.u32 %s1369_s27, 8  ;;  %s406_s20 = scalar_lea.vmem [#allocation7], %s1601_s2 }
  0x49   : > { %550 = vrot.lane.b32.xlu0 %v440_v3, %s1386_s21  ;;  %v603_v8 = vld [vmem:[%s428_s13] sm:$0xff]  ;;  %444 = vperm.xlu1 %1171, %v440_v3   ;;  %v507_v30 = vrot.slane %v1575_v13, %v506_v27  ;;  %v475_v35 = vrot.slane %v1575_v13, %v474_v19  ;;  %v562_v42 = vsub.f32 %v1575_v13, %v560_v40  ;;  %s797_s19 = sshll.u32 %s406_s20, 4  ;;  %s1621_s22 = scalar_lea.hbm %s1739_s5, %s1614_s10  ;;  %s1623_s19 = int_to_ptr.vmem [resolvable:$true] %s797_s19 }
  0x4a   : > { %1065 = vmatmul.mubr.msk.f32.vlgmr.msra.gmra.mxu0 %vm608_vm0, %v603_v8  ;;  %v465_v23 = vrot.slane %v455_v18, %v1577_v17  ;;  %v489_v24 = vrot.slane %v479_v20, %v474_v19  ;;  %v541_v25 = vrot.slane %v531_v22, %v526_v21  ;;  %v461_v34 = vrot.slane %v451_v32, %v1577_v17  ;;  %s771_s27 = scalar_lea.sflag [#allocation4], %s1549_s17  ;;  %s1237_s12 = scalar_lea.vmem %s1623_s19, 256 }
  0x4b   : > { %v517_v33 = vrot.slane %v507_v30, %v502_v29  ;;  %v485_v39 = vrot.slane %v475_v35, %v474_v19  ;;  %v563_v45 = vmax.f32 %v562_v42, 0.0  ;;  %v696_v54 = vrot.slane %v691_v52, %v474_v19  ;;  %p1238_p8 = scmp.ne.s32.totalorder %s1623_s19, %s1237_s12  ;;  %s1390_s9 = smov [#allocation7]  }
  0x4c   : > { %v700_v56 = vrot.slane %v691_v52, %v1577_v17  ;;  %v716_v57 = vrot.slane %v691_v52, %v526_v21  ;;  %v720_v58 = vrot.slane %v691_v52, %v502_v29  ;;  %v527_v59 = vrot.slane %v1575_v13, %v526_v21  ;;  %s1241_s13 = sshll.u32 %s1390_s9, 4  ;;  %s1242_s13 = int_to_ptr.vmem [resolvable:$false] %s1241_s13 }
  0x4d   : > { %1172 = vset.pattern.permute.xlu1 %v1387_v9  ;;  %v1064_v48 = vrot.slane %v563_v45, 9  ;;  %v706_v60 = vrot.slane %v696_v54, %v474_v19  ;;  %v503_v2 = vrot.slane %v1575_v13, %v502_v29  ;;  %p1239_p3 = pnand %p1238_p8, %p1488_p9  ;;  %s1243_s21 = scalar_lea.vmem %s1242_s13, 512 }
  0x4e   : > { %469 = vperm.xlu1 %1172, %v440_v3   ;;  %v710_v61 = vrot.slane %v700_v56, %v474_v19  ;;  %v726_v62 = vrot.slane %v716_v57, %v526_v21  ;;  %v730_v63 = vrot.slane %v720_v58, %v526_v21  ;;  %v537_v4 = vrot.slane %v527_v59, %v526_v21  ;;  %p1244_p5 = scmp.lt.s32.totalorder %s1623_s19, %s1242_s13  ;;  %p1245_p12 = scmp.lt.s32.totalorder %s1243_s21, %s1237_s12 }
  0x4f   : > { %v568_v49 = vmul.f32 %v1064_v48, %v563_v45  ;;  %v513_v9 = vrot.slane %v503_v2, %v502_v29  ;;  %p1240_p13 = pneg %p1239_p3 }
  0x50   : > { %p1246_p6 = por %p1245_p12, %p1244_p5 }
  0x51   : > { %v1590_v50 = vrot.slane %v568_v49, %v454_v14 }
  0x52   : > { %1174 = vset.pattern.permute.xlu1 %v1388_v10  ;;  %p1247_p7 = pnand %p1246_p6, %p1240_p13 }
  0x53   : > { %521 = vperm.xlu1 %1174, %v440_v3   ;;  %v592_v51 = vrot.slane %v1590_v50, %v1577_v17 }
  0x57   : > { %1175 = vset.pattern.permute.xlu1 %v1384_v1 }
  0xbb   : > { %v551_v26 = vpop.permute.xlu0 %550 }
  0xbc   : > { %v553_v28 = vsub.f32 %v440_v3, %v551_v26 }
  0xbe   : > { %v554_v31 = vmax.f32 %v553_v28, 0.0 }
  0xc0   : > { %556 = vrot.lane.b32.xlu0 %v554_v31, %s1389_s23 }
  0xc4   : > { %497 = vperm.xlu0 %1173, %v440_v3   ;;  %v445_v36 = vpop.permute.xlu1 %444  ;;  %v750_v3 = vand.u32 127, %v448_v11 }
  0xc5   : > { %v466_v37 = vmin.f32 %v445_v36, %v461_v34  ;;  %v467_v38 = vmin.f32 %v445_v36, %v465_v23  ;;  %v735_v12 = vsub.f32 %v445_v36, %v706_v60  ;;  %v736_v14 = vsub.f32 %v445_v36, %v710_v61 }
  0xc6   : > { %v751_v10 = vadd.s32 128, %v750_v3 }
  0xc8   : > { %1176 = vset.pattern.permute.xlu0 %v1384_v1  ;;  %vm757_vm1 = vcmp.lt.s32.totalorder %v751_v10, 225 }
  0xc9   : > { %v470_v41 = vpop.permute.xlu1 %469  ;;  %v1068_v34 = vsel %vm757_vm1, 1.0, %v1383_v0 }
  0xca   : > { %v490_v43 = vmax.f32 %v470_v41, %v485_v39  ;;  %v491_v44 = vmax.f32 %v470_v41, %v489_v24  ;;  %v711_v5 = vsub.f32 %v706_v60, %v470_v41  ;;  %v712_v6 = vsub.f32 %v710_v61, %v470_v41 }
  0xcb   : > { %v578_v39 = vrot.slane %v568_v49, %v1577_v17 }
  0xcc   : > { %v492_v46 = vsub.f32 %v466_v37, %v490_v43  ;;  %v493_v47 = vsub.f32 %v467_v38, %v491_v44 }
  0xcd   : > { %v588_v40 = vrot.slane %v578_v39, %v1577_v17 }
  0xce   : > { %v522_v1 = vpop.permute.xlu1 %521  ;;  %v494_v11 = vmax.f32 %v492_v46, 0.0  ;;  %v495_v21 = vmax.f32 %v493_v47, 0.0 }
  0xcf   : > { %v731_v7 = vsub.f32 %v726_v62, %v522_v1  ;;  %v732_v8 = vsub.f32 %v730_v63, %v522_v1  ;;  %v542_v15 = vmax.f32 %v522_v1, %v537_v4  ;;  %v543_v16 = vmax.f32 %v522_v1, %v541_v25 }
  0xd1   : > { %v733_v18 = vmin.f32 %v711_v5, %v731_v7  ;;  %v734_v19 = vmin.f32 %v712_v6, %v732_v8 }
 0x10a   : > { %v678_v52 = vpop.f32.mrf.mxu0 }
 0x132   : > { %v557_v53 = vpop.permute.xlu0 %556 }
 0x133   : > { %v559_v55 = vmul.f32 %v557_v53, %v554_v31 }
 0x135   : > { %571 = vperm.xlu1 %1175, %v559_v55  }
 0x13f   : > { %v498_v20 = vpop.permute.xlu0 %497 }
 0x140   : > { %v518_v22 = vmin.f32 %v498_v20, %v513_v9  ;;  %v519_v23 = vmin.f32 %v498_v20, %v517_v33  ;;  %v737_v24 = vsub.f32 %v498_v20, %v726_v62  ;;  %v738_v13 = vsub.f32 %v498_v20, %v730_v63 }
 0x142   : > { %v544_v26 = vsub.f32 %v518_v22, %v542_v15  ;;  %v545_v27 = vsub.f32 %v519_v23, %v543_v16  ;;  %v739_v28 = vmin.f32 %v735_v12, %v737_v24  ;;  %v740_v29 = vmin.f32 %v736_v14, %v738_v13 }
 0x144   : > { %v546_v30 = vmax.f32 %v544_v26, 0.0  ;;  %v547_v31 = vmax.f32 %v545_v27, 0.0  ;;  %v741_v25 = vmin.f32 %v733_v18, %v739_v28  ;;  %v742_v32 = vmin.f32 %v734_v19, %v740_v29 }
 0x146   : > { %vm743_vm2 = vcmp.gt.f32.partialorder %v741_v25, 1e-09  ;;  %vm744_vm3 = vcmp.gt.f32.partialorder %v742_v32, 1e-09  ;;  %v548_v33 = vmul.f32 %v546_v30, %v494_v11  ;;  %v549_v35 = vmul.f32 %v547_v31, %v495_v21 }
 0x147   : > { %v1066_v36 = vsel %vm743_vm2, 1.0, %v1383_v0  ;;  %v1067_v37 = vsel %vm744_vm3, 1.0, %v1383_v0 }
 0x148   : > { %v763_v38 = vmul.f32 %v1068_v34, %v1067_v37  ;;  %768 = vst [vmem:[%s1607_s15] sm:$0xff] %v1066_v36 }
 0x14a   : > { %769 = vst [vmem:[%s1607_s15 + $0x8] sm:$0xff] %v763_v38 }
 0x1b0   : > { %v572_v41 = vpop.permute.xlu1 %571 }
 0x1b1   : > { %v593_v42 = vadd.f32 %v588_v40, %v572_v41  ;;  %v594_v43 = vadd.f32 %v592_v51, %v572_v41 }
 0x1b3   : > { %v595_v44 = vsub.f32 %v593_v42, %v548_v33  ;;  %v596_v45 = vsub.f32 %v594_v43, %v549_v35 }
 0x1b5   : > { %v597_v46 = vadd.f32 1e-09, %v595_v44  ;;  %v598_v0 = vadd.f32 1e-09, %v596_v45 }
 0x1b7   : > { %1177 = vrcp.f32 %v597_v46 }
 0x1b8   : > { %1179 = vrcp.f32 %v598_v0 }
 0x1c4   : > { %v1178_v47 = vpop.eup %1177 }
 0x1c5   : > { %v1180_v48 = vpop.eup %1179  ;;  %v600_v49 = vmul.f32 %v1178_v47, %v548_v33 }
 0x1c6   : > { %v602_v17 = vmul.f32 %v1180_v48, %v549_v35 }
 0x1c7   : > { %v683_v50 = vmul.f32 %v600_v49, %v600_v49  ;;  %764 = vst [vmem:[%s406_s20] sm:$0xff] %v600_v49 }
 0x1c8   : > { %v684_v51 = vmul.f32 %v602_v17, %v602_v17  ;;  %765 = vst [vmem:[%s406_s20 + $0x8] sm:$0xff] %v602_v17 }
 0x1c9   : > { %v685_v53 = vmul.f32 %v683_v50, %v683_v50 }
 0x1ca   : > { %1250 = shalt.err (!%p1247_p7)
}
 0x1cb   : > { %s1251_s23 = scalar_lea.hbm %s1621_s22, 256  ;;  %s1255_s26 = scalar_lea.hbm %s1739_s5, 512 }
 0x1cc   : > { %p1252_p1 = scmp.ne.s32.totalorder %s1621_s22, %s1251_s23  ;;  %p1256_p10 = scmp.lt.s32.totalorder %s1621_s22, %s1739_s5 }
 0x1cd   : > { %p1257_p0 = scmp.lt.s32.totalorder %s1255_s26, %s1251_s23 }
 0x1ce   : > { %p1253_p2 = pnand %p1252_p1, %p1488_p9 }
 0x1cf   : > { %p1258_p8 = por %p1257_p0, %p1256_p10 }
 0x1d0   : > { %p1254_p4 = pneg %p1253_p2 }
 0x1d2   : > { %p1259_p3 = pnand %p1258_p8, %p1254_p4 }
 0x1d4   : > { %1262 = shalt.err (!%p1259_p3)
}
 0x1d5   : > { %1089 = dma.vmem_to_hbm [thread:$0]  (%p1488_p9), %s1623_s19, 256, %s1621_s22, %s771_s27   ;;  %v686_v54 = vmul.f32 %v684_v51, %v684_v51  ;;  %v687_v55 = vmul.f32 %v685_v53, %v683_v50  ;;  %v680_v58 = vpop.f32.mrf.mxu0 }
 0x1d6   : > { %s775_s8 = sand.u32 1, %s1464_s30   ;;  %s413_s12 = scalar_lea.vmem [#allocation8], %s1601_s2 }
 0x1d7   : > { %s813_s9 = sshll.u32 %s413_s12, 4  ;;  %v688_v56 = vmul.f32 %v686_v54, %v684_v51  ;;  %s829_s13 = sshll.u32 %s1607_s15, 4  ;;  %v689_v57 = vmul.f32 %v687_v55, %v678_v52  ;;  %s1655_s9 = int_to_ptr.vmem [resolvable:$true] %s813_s9  ;;  %s1663_s13 = int_to_ptr.vmem [resolvable:$true] %s829_s13 }
 0x1d8   : > { %s1653_s17 = scalar_lea.hbm %s1740_s6, %s1614_s10  ;;  %s1661_s19 = scalar_lea.hbm %s1741_s7, %s1614_s10 }
 0x1d9   : > { %v690_v59 = vmul.f32 %v688_v56, %v680_v58  ;;  %766 = vst [vmem:[%s413_s12] sm:$0xff] %v689_v57  ;;  %s1665_s15 = scalar_lea.sflag [#allocation9], %s775_s8  ;;  %s1263_s22 = scalar_lea.vmem %s1655_s9, 256 }
 0x1da   : > { %p1264_p13 = scmp.ne.s32.totalorder %s1655_s9, %s1263_s22  ;;  %s1391_s27 = smov [#allocation8]  }
 0x1db   : > { %767 = vst [vmem:[%s413_s12 + $0x8] sm:$0xff] %v690_v59  ;;  %s1267_s18 = sshll.u32 %s1391_s27, 4  ;;  %s1268_s18 = int_to_ptr.vmem [resolvable:$false] %s1267_s18 }
 0x1dc   : > { %p1265_p5 = pnand %p1264_p13, %p1488_p9  ;;  %s1269_s26 = scalar_lea.vmem %s1268_s18, 512 }
 0x1dd   : > { %p1270_p6 = scmp.lt.s32.totalorder %s1655_s9, %s1268_s18  ;;  %p1271_p7 = scmp.lt.s32.totalorder %s1269_s26, %s1263_s22 }
 0x1de   : > { %p1266_p12 = pneg %p1265_p5 }
 0x1df   : > { %p1272_p1 = por %p1271_p7, %p1270_p6 }
 0x1e1   : > { %p1273_p2 = pnand %p1272_p1, %p1266_p12 }
 0x1e3   : > { %1276 = shalt.err (!%p1273_p2)
}
 0x1e4   : > { %s1277_s10 = scalar_lea.hbm %s1653_s17, 256  ;;  %s1281_s8 = scalar_lea.hbm %s1740_s6, 512 }
 0x1e5   : > { %p1278_p4 = scmp.ne.s32.totalorder %s1653_s17, %s1277_s10  ;;  %p1282_p8 = scmp.lt.s32.totalorder %s1653_s17, %s1740_s6 }
 0x1e6   : > { %p1283_p3 = scmp.lt.s32.totalorder %s1281_s8, %s1277_s10 }
 0x1e7   : > { %p1279_p10 = pnand %p1278_p4, %p1488_p9 }
 0x1e8   : > { %p1284_p13 = por %p1283_p3, %p1282_p8 }
 0x1e9   : > { %p1280_p0 = pneg %p1279_p10 }
 0x1eb   : > { %p1285_p5 = pnand %p1284_p13, %p1280_p0 }
 0x1ed   : > { %1288 = shalt.err (!%p1285_p5)
}
 0x1ee   : > { %1090 = dma.vmem_to_hbm [thread:$0]  (%p1488_p9), %s1655_s9, 256, %s1653_s17, %s1665_s15  }
 0x1ef   : > { %s1289_s23 = scalar_lea.vmem %s1663_s13, 256  ;;  %s1392_s30 = smov [#allocation10]  }
 0x1f0   : > { %p1290_p12 = scmp.ne.s32.totalorder %s1663_s13, %s1289_s23  ;;  %s1293_s2 = sshll.u32 %s1392_s30, 4  ;;  %s1294_s2 = int_to_ptr.vmem [resolvable:$false] %s1293_s2 }
 0x1f1   : > { %s1295_s22 = scalar_lea.vmem %s1294_s2, 512  ;;  %p1296_p1 = scmp.lt.s32.totalorder %s1663_s13, %s1294_s2 }
 0x1f2   : > { %p1291_p6 = pnand %p1290_p12, %p1488_p9  ;;  %p1297_p2 = scmp.lt.s32.totalorder %s1295_s22, %s1289_s23 }
 0x1f4   : > { %p1292_p7 = pneg %p1291_p6  ;;  %p1298_p4 = por %p1297_p2, %p1296_p1 }
 0x1f6   : > { %p1299_p10 = pnand %p1298_p4, %p1292_p7 }
 0x1f8   : > { %1302 = shalt.err (!%p1299_p10)
}
 0x1f9   : > { %s1303_s27 = scalar_lea.hbm %s1661_s19, 256  ;;  %s1307_s18 = scalar_lea.hbm %s1741_s7, 512 }
 0x1fa   : > { %p1304_p0 = scmp.ne.s32.totalorder %s1661_s19, %s1303_s27  ;;  %p1308_p13 = scmp.lt.s32.totalorder %s1661_s19, %s1741_s7 }
 0x1fb   : > { %p1309_p5 = scmp.lt.s32.totalorder %s1307_s18, %s1303_s27 }
 0x1fc   : > { %p1305_p8 = pnand %p1304_p0, %p1488_p9 }
 0x1fd   : > { %p1310_p12 = por %p1309_p5, %p1308_p13 }
 0x1fe   : > { %p1306_p3 = pneg %p1305_p8 }
 0x200   : > { %p1311_p6 = pnand %p1310_p12, %p1306_p3 }
 0x202   : > { %1314 = shalt.err (!%p1311_p6)
}
 0x203   : > { %1091 = dma.vmem_to_hbm [thread:$0]  (%p1488_p9), %s1663_s13, 256, %s1661_s19, %s1665_s15  }
 0x204 PF: > { %s841_s20 = sand.u32 1, %s1357_s24   ;;  %p1756_p7 = scmp.ge.s32.totalorder %s1377_s29, 2 }
 0x205   : > { %s842_s11 = scalar_lea.sflag [#allocation4], %s841_s20 }
 0x206   : > { %p1103_p1 = pnand %p1756_p7, %p1497_p11 }
 0x208   : > { %p1104_p2 = pneg %p1103_p1 }
 0x20a   : > { %1348 = dma.done.wait (%p1104_p2), %s842_s11, 256  }
 0x20b   : > { %1350 = vsyncadd (%p1104_p2), %s842_s11, 4294967040  ;;  %s1757_s8 = sadd.s32 4294967294, %s1377_s29  }
 0x20c   : > { %s850_s12 = sand.u32 1, %s1757_s8  }
 0x20d   : > { %s851_s14 = scalar_lea.sflag [#allocation9], %s850_s12 }
 0x20e   : > { %1352 = dma.done.wait (%p1104_p2), %s851_s14, 512  }
 0x20f   : > { %1354 = vsyncadd (%p1104_p2), %s851_s14, 4294966784  ;;  %s30_s29 = sadd.s32 1, %s1377_s29   ;;  %s1758_s13 = sld [smem:[#allocation15_spill]] }
 0x210   : > { %p27_p9 = scmp.ge.s32.totalorder %s30_s29, 4   ;;  %s1759_s26 = sld [smem:[#allocation17_spill]] }
 0x211   : > { %s1760_s16 = sld [smem:[#allocation16_spill]]  ;;  %s1761_s24 = smov %s1361_s25 }
 0x212   : > { %s1763_s27 = smov %s1373_s28 }
 0x213   :  { %29 = sbr.rel (!%p27_p9) target bundleno = 12 (0xc), region = 139 }
 0x215   : > { %s1762_s25 = smov %s1758_s13 }
 0x217   : > { %s1764_s28 = smov %s1760_s16 }
 0x218   :  { %865 = vsyncpa [#allocation3], 1 }
 0x219   :  { %867 = vsyncpa [#allocation3 + $0x1], 1 }
 0x21a   :  { %868 = vsyncpa [#allocation6], 1 }
 0x21b   :  { %870 = vsyncpa [#allocation6 + $0x1], 1 }
 0x21c   :  { %871 = vsyncpa [#allocation4], 1 }
 0x21d   :  { %873 = vsyncpa [#allocation4 + $0x1], 1 }
 0x21e   :  { %874 = vsyncpa [#allocation9], 1 }
 0x21f   :  { %876 = vsyncpa [#allocation9 + $0x1], 1 }

</bundles_post_ra>
